<compile_context>
chip_gen: v7x
topology: tpu7x:2x2x1
jax: 0.10.0
libtpu: 0.0.40
codegen_flags: <defaults>
</compile_context>

<pallas_src>
import functools

import jax
import jax.numpy as jnp
from jax.experimental import pallas as pl
from jax.experimental.pallas import tpu as pltpu

LANE = 128  # per-tap contraction width (lane-padded) and MXU lane width


# --------------------------------------------------------------------------
# Banded ("Toeplitz") weights: fold (kw, Cin, 'same' horizontal padding, pool
# column parity) into a single matmul operand of shape (KH*LANE, 2*Wo*Cout):
#   B[kh*LANE + x_in*Cin + ci, dw*Wo*Cout + wo*Cout + co]
#       = W[co, ci, kh, kw]   with kw = x_in - (2*wo + dw) + pad, 0 <= kw < KW
# Rows for lanes >= Win*Cin (lane padding) are zero.  Built ONCE per layer.
# --------------------------------------------------------------------------
def _make_banded_weight(w_oihw, w_in):
    co_n, ci_n, kh_n, kw_n = w_oihw.shape
    pad = kh_n // 2
    wo_n = w_in // 2
    w_hwio = jnp.transpose(w_oihw.astype(jnp.float32), (2, 3, 1, 0))   # (KH, KW, Ci, Co)
    x_in = jnp.arange(w_in)
    x_out = 2 * jnp.arange(wo_n)[None, :] + jnp.arange(2)[:, None]     # (2, Wo)
    kw = x_in[:, None, None] - x_out[None, :, :] + pad                 # (Win, 2, Wo)
    valid = (kw >= 0) & (kw < kw_n)
    g = w_hwio[:, jnp.clip(kw, 0, kw_n - 1)]                           # (KH, Win, 2, Wo, Ci, Co)
    g = jnp.where(valid[None, :, :, :, None, None], g, 0.0)
    g = jnp.transpose(g, (0, 1, 4, 2, 3, 5))                           # (KH, Win, Ci, 2, Wo, Co)
    g = g.reshape(kh_n, w_in * ci_n, 2 * wo_n * co_n)
    g = jnp.pad(g, ((0, 0), (0, LANE - w_in * ci_n), (0, 0)))          # lane-pad K per tap
    return g.reshape(kh_n * LANE, 2 * wo_n * co_n)                     # (KH*128, 2*Wo*Co)


# --------------------------------------------------------------------------
# Fused kernel: for each batch element, run ALL conv blocks
#   (Conv 'same' -> bias -> ReLU -> 2x2 MaxPool) entirely in VMEM.
#   refs = [x, w_0..w_{L-1}, b_0..b_{L-1}, out, scratch_0..scratch_{L-2}]
# --------------------------------------------------------------------------
def _fused_convs_kernel(*refs, hcs, wcs, pad, kh_taps, n_layers):
    x_ref = refs[0]
    w_refs = refs[1:1 + n_layers]
    b_refs = refs[1 + n_layers:1 + 2 * n_layers]
    o_ref = refs[1 + 2 * n_layers]
    s_refs = refs[2 + 2 * n_layers:]

    for li in range(n_layers):
        hc, wc = hcs[li], wcs[li]            # conv rows, Wo*Cout lanes for this layer

        def rows(p, _li=li, _hc=hc):
            if _li == 0:
                return x_ref[0, p:p + _hc, :]            # (hc, 128) padded input rows
            return s_refs[_li - 1][p:p + _hc, :]         # (hc, 128) padded scratch rows

        # KH taps folded onto the contraction: one (hc, KH*128) slab, ONE MXU matmul.
        slab = jnp.concatenate([rows(p) for p in range(kh_taps)], axis=1)
        acc = jnp.dot(slab, w_refs[li][...],
                      preferred_element_type=jnp.float32)              # (hc, 2*wc)

        # 2x2 max pool: width parity halves (lane-folded) then adjacent row pairs;
        # bias + ReLU commute with max, applied once on the pooled rows.
        m = jnp.maximum(acc[:, 0:wc], acc[:, wc:2 * wc])               # (hc, wc)
        p_rows = jnp.max(m.reshape(hc // 2, 2, wc), axis=1)            # (hc//2, wc)
        y = jnp.maximum(p_rows + b_refs[li][...], 0.0)

        if li + 1 < n_layers:
            # hand off through VMEM: y becomes the next layer's vertically padded input
            s = s_refs[li]
            s[...] = jnp.zeros_like(s)                                 # 'same' pad rows
            s[pad:pad + hc // 2, 0:wc] = y
        else:
            # pack two pooled rows per stored row -> 128-lane-dense output block
            yp = y.reshape(hc // 4, 2, wc)
            o_ref[0, :, 0:wc] = yp[:, 0, :]
            o_ref[0, :, wc:2 * wc] = yp[:, 1, :]


# --------------------------------------------------------------------------
# Builder: banded weights / biases / specs are constructed ONCE here (hoisted
# out of the per-forward path); the returned jitted forward only does layout
# glue + one pallas_call.
# --------------------------------------------------------------------------
def make_convs_base_forward(params, input_shape):
    n, cin, h, w = input_shape
    n_layers = len(params)
    kh = int(params[0][0].shape[2])
    pad = kh // 2

    hcs, wcs, w_bands, b_rows = [], [], [], []
    cur_h, cur_w, cur_c = h, w, cin
    for (w_oihw, b) in params:
        co, ci, k1, k2 = w_oihw.shape
        assert ci == cur_c and k1 == kh and k2 == kh and kh % 2 == 1
        assert cur_h % 2 == 0 and cur_w % 2 == 0
        assert cur_w * cur_c <= LANE, "folded (W, Cin) must fit one 128-lane tap"
        wo = cur_w // 2
        w_bands.append(_make_banded_weight(w_oihw, cur_w))
        b_rows.append(jnp.tile(b.astype(jnp.float32), wo).reshape(1, wo * co))
        hcs.append(cur_h)
        wcs.append(wo * co)
        cur_h, cur_w, cur_c = cur_h // 2, wo, co
    assert hcs[-1] % 4 == 0, "last layer packs two pooled rows per stored row"

    hp0 = h + 2 * pad
    out_rows = hcs[-1] // 4
    out_lanes = 2 * wcs[-1]

    kernel = functools.partial(
        _fused_convs_kernel, hcs=tuple(hcs), wcs=tuple(wcs),
        pad=pad, kh_taps=kh, n_layers=n_layers)

    in_specs = (
        [pl.BlockSpec((1, hp0, LANE), lambda nn: (nn, 0, 0))]
        + [pl.BlockSpec(wb.shape, lambda nn: (0, 0)) for wb in w_bands]
        + [pl.BlockSpec(br.shape, lambda nn: (0, 0)) for br in b_rows]
    )
    out_spec = pl.BlockSpec((1, out_rows, out_lanes), lambda nn: (nn, 0, 0))
    scratch_shapes = [
        pltpu.VMEM((pl.cdiv(hcs[i] + 2 * pad, 8) * 8, LANE), jnp.float32)
        for i in range(1, n_layers)
    ]

    call = pl.pallas_call(
        kernel,
        out_shape=jax.ShapeDtypeStruct((n, out_rows, out_lanes), jnp.float32),
        grid=(n,),
        in_specs=in_specs,
        out_specs=out_spec,
        scratch_shapes=scratch_shapes,
        compiler_params=pltpu.CompilerParams(dimension_semantics=("parallel",)),
    )

    hl, wl, cl = cur_h, cur_w, cur_c   # final pooled spatial / channels

    @jax.jit
    def forward(x_nchw):
        # NCHW -> NHWC, fold (W, Cin) onto lanes, vertical 'same' pad, lane-pad to 128.
        xs = jnp.transpose(x_nchw.astype(jnp.float32), (0, 2, 3, 1)).reshape(n, h, w * cin)
        xs = jnp.pad(xs, ((0, 0), (pad, pad), (0, LANE - w * cin)))
        out = call(xs, *w_bands, *b_rows)          # (N, Ho_last/2, 2*Wo_last*C_last)
        y = out.reshape(n, hl, wl, cl)             # un-pack the two-rows-per-row fold
        return jnp.transpose(y, (0, 3, 1, 2))      # back to NCHW

    return forward


# --------------------------------------------------------------------------
# Pure-JAX reference (for correctness check)
# --------------------------------------------------------------------------
def reference_forward(x_nchw, params):
    y = jnp.transpose(x_nchw, (0, 2, 3, 1)).astype(jnp.float32)
    for (w_oihw, b) in params:
        w_hwio = jnp.transpose(w_oihw, (2, 3, 1, 0))
        y = jax.lax.conv_general_dilated(
            y, w_hwio, window_strides=(1, 1), padding="SAME",
            dimension_numbers=("NHWC", "HWIO", "NHWC"))
        y = jnp.maximum(y + b, 0.0)
        y = jax.lax.reduce_window(
            y, -jnp.inf, jax.lax.max, (1, 2, 2, 1), (1, 2, 2, 1), "VALID")
    return jnp.transpose(y, (0, 3, 1, 2))


if __name__ == "__main__":
    # ConvsBase(dimensionality=2, input_channels=4, channels=[8, 16],
    #           convolution_kernels=5, strides=1, pooling_size=2, padding='same')
    N, Cin, H, W = 2, 4, 16, 16
    channels = (8, 16)
    K = 5

    x = jax.random.normal(jax.random.PRNGKey(0), (N, Cin, H, W), jnp.float32)

    # deterministic parameter init (kaiming-ish scaling)
    params = []
    prev = Cin
    pkeys = jax.random.split(jax.random.PRNGKey(1), 2 * len(channels))
    for i, c in enumerate(channels):
        fan_in = prev * K * K
        wgt = jax.random.normal(pkeys[2 * i], (c, prev, K, K), jnp.float32) / jnp.sqrt(fan_in)
        b = 0.1 * jax.random.normal(pkeys[2 * i + 1], (c,), jnp.float32)
        params.append((wgt, b))
        prev = c

    fwd = make_convs_base_forward(params, (N, Cin, H, W))   # banded weights built ONCE
    out = jax.block_until_ready(fwd(x))

    assert out.shape == (N, channels[-1], H // 4, W // 4), out.shape
    ref = reference_forward(x, params)
    err = float(jnp.max(jnp.abs(out - ref)))
    assert jnp.allclose(out, ref, atol=1e-4, rtol=1e-4), err

    print("KERNEL_OK")
</pallas_src>

<mosaic_0001>
module attributes {stable_mosaic.version = 11 : i64} {
  func.func @_fused_convs_kernel(%arg0: i32, %arg1: memref<1x20x128xf32, #tpu.memory_space<vmem>>, %arg2: memref<640x128xf32, #tpu.memory_space<vmem>>, %arg3: memref<640x128xf32, #tpu.memory_space<vmem>>, %arg4: memref<1x64xf32, #tpu.memory_space<vmem>>, %arg5: memref<1x64xf32, #tpu.memory_space<vmem>>, %arg6: memref<1x2x128xf32, #tpu.memory_space<vmem>>, %arg7: memref<16x128xf32, #tpu.memory_space<vmem>>) attributes {dimension_semantics = [#tpu.dimension_semantics<parallel>], iteration_bounds = array<i64: 2>, scalar_prefetch = 0 : i64, scratch_operands = 1 : i64, tpu.core_type = #tpu.core_type<tc>, window_params = [{transform_indices = @transform_0, window_bounds = array<i64: 1, 20, 128>}, {pipeline_mode = #tpu.pipeline_mode<synchronous>, transform_indices = @transform_1, window_bounds = array<i64: 640, 128>}, {pipeline_mode = #tpu.pipeline_mode<synchronous>, transform_indices = @transform_2, window_bounds = array<i64: 640, 128>}, {pipeline_mode = #tpu.pipeline_mode<synchronous>, transform_indices = @transform_3, window_bounds = array<i64: 1, 64>}, {pipeline_mode = #tpu.pipeline_mode<synchronous>, transform_indices = @transform_4, window_bounds = array<i64: 1, 64>}, {transform_indices = @transform_5, window_bounds = array<i64: 1, 2, 128>}]} {
    %c0 = arith.constant 0 : index
    %c0_0 = arith.constant 0 : index
    %c0_1 = arith.constant 0 : index
    %0 = vector.load %arg1[%c0, %c0_0, %c0_1] : memref<1x20x128xf32, #tpu.memory_space<vmem>>, vector<1x16x128xf32>
    %1 = vector.shape_cast %0 : vector<1x16x128xf32> to vector<16x128xf32>
    %c0_2 = arith.constant 0 : index
    %c1 = arith.constant 1 : index
    %c0_3 = arith.constant 0 : index
    %2 = vector.load %arg1[%c0_2, %c1, %c0_3] : memref<1x20x128xf32, #tpu.memory_space<vmem>>, vector<1x16x128xf32>
    %3 = vector.shape_cast %2 : vector<1x16x128xf32> to vector<16x128xf32>
    %c0_4 = arith.constant 0 : index
    %c2 = arith.constant 2 : index
    %c0_5 = arith.constant 0 : index
    %4 = vector.load %arg1[%c0_4, %c2, %c0_5] : memref<1x20x128xf32, #tpu.memory_space<vmem>>, vector<1x16x128xf32>
    %5 = vector.shape_cast %4 : vector<1x16x128xf32> to vector<16x128xf32>
    %c0_6 = arith.constant 0 : index
    %c3 = arith.constant 3 : index
    %c0_7 = arith.constant 0 : index
    %6 = vector.load %arg1[%c0_6, %c3, %c0_7] : memref<1x20x128xf32, #tpu.memory_space<vmem>>, vector<1x16x128xf32>
    %7 = vector.shape_cast %6 : vector<1x16x128xf32> to vector<16x128xf32>
    %c0_8 = arith.constant 0 : index
    %c4 = arith.constant 4 : index
    %c0_9 = arith.constant 0 : index
    %8 = vector.load %arg1[%c0_8, %c4, %c0_9] : memref<1x20x128xf32, #tpu.memory_space<vmem>>, vector<1x16x128xf32>
    %9 = vector.shape_cast %8 : vector<1x16x128xf32> to vector<16x128xf32>
    %10 = tpu.concatenate %1, %3, %5, %7, %9 in 1 : vector<16x128xf32>, vector<16x128xf32>, vector<16x128xf32>, vector<16x128xf32>, vector<16x128xf32> -> vector<16x640xf32>
    %c0_10 = arith.constant 0 : index
    %c0_11 = arith.constant 0 : index
    %11 = vector.load %arg2[%c0_10, %c0_11] : memref<640x128xf32, #tpu.memory_space<vmem>>, vector<640x128xf32>
    %cst = arith.constant dense<0.000000e+00> : vector<16x128xf32>
    %12 = tpu.matmul %10, %11, %cst {dimension_numbers = #tpu.dot_dimension_numbers<[1], [0], [0], [1], [0, 0, 1, 1], [], []>} : vector<16x640xf32>, vector<640x128xf32>, vector<16x128xf32> -> vector<16x128xf32>
    %13 = vector.extract_strided_slice %12 {offsets = [0, 0], sizes = [16, 64], strides = [1, 1]} : vector<16x128xf32> to vector<16x64xf32>
    %14 = vector.extract_strided_slice %12 {offsets = [0, 64], sizes = [16, 64], strides = [1, 1]} : vector<16x128xf32> to vector<16x64xf32>
    %15 = arith.maximumf %13, %14 : vector<16x64xf32>
    %16 = vector.shape_cast %15 : vector<16x64xf32> to vector<8x2x64xf32>
    %cst_12 = arith.constant dense<0xFF800000> : vector<8x64xf32>
    %17 = vector.multi_reduction <maximumf>, %16, %cst_12 [1] : vector<8x2x64xf32> to vector<8x64xf32>
    %c0_13 = arith.constant 0 : index
    %c0_14 = arith.constant 0 : index
    %18 = vector.load %arg4[%c0_13, %c0_14] : memref<1x64xf32, #tpu.memory_space<vmem>>, vector<1x64xf32>
    %19 = vector.broadcast %18 : vector<1x64xf32> to vector<8x64xf32>
    %20 = arith.addf %17, %19 : vector<8x64xf32>
    %cst_15 = arith.constant 0.000000e+00 : f32
    %21 = vector.broadcast %cst_15 : f32 to vector<8x64xf32>
    %22 = arith.maximumf %20, %21 : vector<8x64xf32>
    %cst_16 = arith.constant 0.000000e+00 : f32
    %23 = vector.broadcast %cst_16 : f32 to vector<16x128xf32>
    %c0_17 = arith.constant 0 : index
    %c0_18 = arith.constant 0 : index
    %24 = vector.load %arg7[%c0_17, %c0_18] : memref<16x128xf32, #tpu.memory_space<vmem>>, vector<16x128xf32>
    tpu.vector_store %arg7[%c0_17, %c0_18], %23 {strides = array<i32>} : memref<16x128xf32, #tpu.memory_space<vmem>>, vector<16x128xf32>,
    %c2_19 = arith.constant 2 : index
    %c0_20 = arith.constant 0 : index
    %25 = vector.load %arg7[%c2_19, %c0_20] : memref<16x128xf32, #tpu.memory_space<vmem>>, vector<8x64xf32>
    tpu.vector_store %arg7[%c2_19, %c0_20], %22 {strides = array<i32>} : memref<16x128xf32, #tpu.memory_space<vmem>>, vector<8x64xf32>,
    %c0_21 = arith.constant 0 : index
    %c0_22 = arith.constant 0 : index
    %26 = vector.load %arg7[%c0_21, %c0_22] : memref<16x128xf32, #tpu.memory_space<vmem>>, vector<8x128xf32>
    %c1_23 = arith.constant 1 : index
    %c0_24 = arith.constant 0 : index
    %27 = vector.load %arg7[%c1_23, %c0_24] : memref<16x128xf32, #tpu.memory_space<vmem>>, vector<8x128xf32>
    %c2_25 = arith.constant 2 : index
    %c0_26 = arith.constant 0 : index
    %28 = vector.load %arg7[%c2_25, %c0_26] : memref<16x128xf32, #tpu.memory_space<vmem>>, vector<8x128xf32>
    %c3_27 = arith.constant 3 : index
    %c0_28 = arith.constant 0 : index
    %29 = vector.load %arg7[%c3_27, %c0_28] : memref<16x128xf32, #tpu.memory_space<vmem>>, vector<8x128xf32>
    %c4_29 = arith.constant 4 : index
    %c0_30 = arith.constant 0 : index
    %30 = vector.load %arg7[%c4_29, %c0_30] : memref<16x128xf32, #tpu.memory_space<vmem>>, vector<8x128xf32>
    %31 = tpu.concatenate %26, %27, %28, %29, %30 in 1 : vector<8x128xf32>, vector<8x128xf32>, vector<8x128xf32>, vector<8x128xf32>, vector<8x128xf32> -> vector<8x640xf32>
    %c0_31 = arith.constant 0 : index
    %c0_32 = arith.constant 0 : index
    %32 = vector.load %arg3[%c0_31, %c0_32] : memref<640x128xf32, #tpu.memory_space<vmem>>, vector<640x128xf32>
    %cst_33 = arith.constant dense<0.000000e+00> : vector<8x128xf32>
    %33 = tpu.matmul %31, %32, %cst_33 {dimension_numbers = #tpu.dot_dimension_numbers<[1], [0], [0], [1], [0, 0, 1, 1], [], []>} : vector<8x640xf32>, vector<640x128xf32>, vector<8x128xf32> -> vector<8x128xf32>
    %34 = vector.extract_strided_slice %33 {offsets = [0, 0], sizes = [8, 64], strides = [1, 1]} : vector<8x128xf32> to vector<8x64xf32>
    %35 = vector.extract_strided_slice %33 {offsets = [0, 64], sizes = [8, 64], strides = [1, 1]} : vector<8x128xf32> to vector<8x64xf32>
    %36 = arith.maximumf %34, %35 : vector<8x64xf32>
    %37 = vector.shape_cast %36 : vector<8x64xf32> to vector<4x2x64xf32>
    %cst_34 = arith.constant dense<0xFF800000> : vector<4x64xf32>
    %38 = vector.multi_reduction <maximumf>, %37, %cst_34 [1] : vector<4x2x64xf32> to vector<4x64xf32>
    %c0_35 = arith.constant 0 : index
    %c0_36 = arith.constant 0 : index
    %39 = vector.load %arg5[%c0_35, %c0_36] : memref<1x64xf32, #tpu.memory_space<vmem>>, vector<1x64xf32>
    %40 = vector.broadcast %39 : vector<1x64xf32> to vector<4x64xf32>
    %41 = arith.addf %38, %40 : vector<4x64xf32>
    %cst_37 = arith.constant 0.000000e+00 : f32
    %42 = vector.broadcast %cst_37 : f32 to vector<4x64xf32>
    %43 = arith.maximumf %41, %42 : vector<4x64xf32>
    %44 = vector.shape_cast %43 : vector<4x64xf32> to vector<2x2x64xf32>
    %45 = vector.extract_strided_slice %44 {offsets = [0, 0, 0], sizes = [2, 1, 64], strides = [1, 1, 1]} : vector<2x2x64xf32> to vector<2x1x64xf32>
    %46 = vector.shape_cast %45 : vector<2x1x64xf32> to vector<2x64xf32>
    %c0_38 = arith.constant 0 : index
    %c0_39 = arith.constant 0 : index
    %c0_40 = arith.constant 0 : index
    %47 = vector.load %arg6[%c0_38, %c0_39, %c0_40] : memref<1x2x128xf32, #tpu.memory_space<vmem>>, vector<1x2x64xf32>
    %48 = vector.shape_cast %47 : vector<1x2x64xf32> to vector<2x64xf32>
    %49 = vector.shape_cast %46 : vector<2x64xf32> to vector<1x2x64xf32>
    tpu.vector_store %arg6[%c0_38, %c0_39, %c0_40], %49 {strides = array<i32>} : memref<1x2x128xf32, #tpu.memory_space<vmem>>, vector<1x2x64xf32>,
    %50 = vector.extract_strided_slice %44 {offsets = [0, 1, 0], sizes = [2, 1, 64], strides = [1, 1, 1]} : vector<2x2x64xf32> to vector<2x1x64xf32>
    %51 = vector.shape_cast %50 : vector<2x1x64xf32> to vector<2x64xf32>
    %c0_41 = arith.constant 0 : index
    %c0_42 = arith.constant 0 : index
    %c64 = arith.constant 64 : index
    %52 = vector.load %arg6[%c0_41, %c0_42, %c64] : memref<1x2x128xf32, #tpu.memory_space<vmem>>, vector<1x2x64xf32>
    %53 = vector.shape_cast %52 : vector<1x2x64xf32> to vector<2x64xf32>
    %54 = vector.shape_cast %51 : vector<2x64xf32> to vector<1x2x64xf32>
    tpu.vector_store %arg6[%c0_41, %c0_42, %c64], %54 {strides = array<i32>} : memref<1x2x128xf32, #tpu.memory_space<vmem>>, vector<1x2x64xf32>,
    return
  }
  func.func @transform_0(%arg0: i32) -> (i32, i32, i32) {
    %c0_i32 = arith.constant 0 : i32
    %c0_i32_0 = arith.constant 0 : i32
    %c0_i32_1 = arith.constant 0 : i32
    return %arg0, %c0_i32, %c0_i32_0 : i32, i32, i32
  }
  func.func @transform_1(%arg0: i32) -> (i32, i32) {
    %c0_i32 = arith.constant 0 : i32
    %c0_i32_0 = arith.constant 0 : i32
    %c0_i32_1 = arith.constant 0 : i32
    return %c0_i32, %c0_i32_0 : i32, i32
  }
  func.func @transform_2(%arg0: i32) -> (i32, i32) {
    %c0_i32 = arith.constant 0 : i32
    %c0_i32_0 = arith.constant 0 : i32
    %c0_i32_1 = arith.constant 0 : i32
    return %c0_i32, %c0_i32_0 : i32, i32
  }
  func.func @transform_3(%arg0: i32) -> (i32, i32) {
    %c0_i32 = arith.constant 0 : i32
    %c0_i32_0 = arith.constant 0 : i32
    %c0_i32_1 = arith.constant 0 : i32
    return %c0_i32, %c0_i32_0 : i32, i32
  }
  func.func @transform_4(%arg0: i32) -> (i32, i32) {
    %c0_i32 = arith.constant 0 : i32
    %c0_i32_0 = arith.constant 0 : i32
    %c0_i32_1 = arith.constant 0 : i32
    return %c0_i32, %c0_i32_0 : i32, i32
  }
  func.func @transform_5(%arg0: i32) -> (i32, i32, i32) {
    %c0_i32 = arith.constant 0 : i32
    %c0_i32_0 = arith.constant 0 : i32
    %c0_i32_1 = arith.constant 0 : i32
    return %arg0, %c0_i32, %c0_i32_0 : i32, i32, i32
  }
}

</mosaic_0001>

<bundles_post_ra>
// kernel: forward.1
= control target key start
LH: loop header
LB: loop body
LE: loop exit
PB: predicated region body
PF: predicated region fallthrough
CT: control target
= control target key end

     0   :  { %10 = vsyncpa [#allocation4], 0  ;;  %s1955_s0 = inlined_call_operand.vmem [shape: f32[2,20,128], index: 0, kind: input, shape index: {}]   ;;  %s1956_s1 = inlined_call_operand.hbm [shape: f32[640,128], index: 1, kind: input, shape index: {}]   ;;  %s1957_s2 = inlined_call_operand.hbm [shape: f32[640,128], index: 2, kind: input, shape index: {}]   ;;  %s1958_s3 = inlined_call_operand.vmem [shape: f32[1,64], index: 3, kind: input, shape index: {}]   ;;  %s1959_s4 = inlined_call_operand.vmem [shape: f32[1,64], index: 4, kind: input, shape index: {}]   ;;  %s1960_s5 = inlined_call_operand.vmem [shape: f32[2,2,128], index: 5, kind: output, shape index: {}]  }
   0x1   :  { %11 = vsyncpa [#allocation6], 0  ;;  %s1789_s18 = smov 0  }
   0x2 LB: > { %s1795_s19 = sadd.s32 4294967295, %s1748_s18   ;;  %p1193_p0 = scmp.ge.s32.totalorder %s1748_s18, 1  ;;  %s1748_s18 = sphi %s1789_s18, %s17_s18  }
   0x3   : > { %p158_p1 = scmp.lt.s32.totalorder %s1748_s18, 3  ;;  %s1750_s20 = smov [#allocation3]  }
   0x4   : > { %s170_s21 = sshll.u32 %s1750_s20, 4  ;;  %p1961_p3 = scmp.eq.s32.totalorder %s1795_s19, 0  ;;  %s171_s21 = int_to_ptr.vmem [resolvable:$true] %s170_s21 }
   0x5   : > { %p1799_p2 = pnand %p1193_p0, %p158_p1  ;;  %s1751_s23 = smov [#allocation5]  }
   0x6   : > { %s183_s24 = sshll.u32 %s1751_s23, 4  ;;  %s1678_s28 = scalar_lea.hbm %s1956_s1, 10240  ;;  %s1812_s24 = int_to_ptr.vmem [resolvable:$true] %s183_s24 }
   0x7   : > { %s1963_s22 = scalar_select %p1799_p2, 1, 0 }
   0x8   : > { %p1650_p4 = pneg %p1799_p2  ;;  %p1679_p6 = scmp.ne.s32.totalorder %s1956_s1, %s1678_s28 }
   0x9   : > { %p1685_p10 = scmp.lt.u32.totalorder %s1678_s28, %s1956_s1 }
   0xa   : > { %p1808_p5 = pnand %p1961_p3, %p1650_p4 }
   0xc   : > { %p1680_p7 = pneg %p1808_p5 }
   0xe   : > { %p1681_p8 = pnand %p1680_p7, %p1679_p6 }
  0x10   : > { %p1682_p9 = pneg %p1681_p8 }
  0x12   : > { %p1687_p11 = pnand %p1685_p10, %p1682_p9 }
  0x14   : > { %1690 = shalt.err (!%p1687_p11)
}
  0x15   : > { %s1691_s8 = scalar_lea.vmem %s171_s21, 10240  ;;  %p1699_p1 = scmp.lt.s32.totalorder %s171_s21, %s171_s21 }
  0x16   : > { %p1692_p12 = scmp.ne.s32.totalorder %s171_s21, %s1691_s8  ;;  %p1700_p4 = scmp.lt.s32.totalorder %s1691_s8, %s1691_s8 }
  0x18   : > { %p1694_p13 = pnand %p1692_p12, %p1680_p7  ;;  %p1701_p3 = por %p1700_p4, %p1699_p1 }
  0x1a   : > { %p1695_p0 = pneg %p1694_p13 }
  0x1c   : > { %p1702_p2 = pnand %p1701_p3, %p1695_p0 }
  0x1e   : > { %1705 = shalt.err (!%p1702_p2)
}
  0x1f   : > { %s1752_s9 = smov 128   ;;  %s1753_s10 = smov 8  }
  0x20   : > { %1653 = dma.hbm_to_vmem [thread:$0]  (!%p1808_p5), %s1956_s1, 10240, %s171_s21, [#allocation4], %s1752_s9, %s1752_s9, %s1753_s10  }
  0x21   : > { %s1706_s15 = scalar_lea.hbm %s1957_s2, 10240 }
  0x22   : > { %p1707_p6 = scmp.ne.s32.totalorder %s1957_s2, %s1706_s15  ;;  %p1713_p8 = scmp.lt.u32.totalorder %s1706_s15, %s1957_s2 }
  0x24   : > { %p1709_p2 = pnand %p1707_p6, %p1680_p7 }
  0x26   : > { %p1710_p3 = pneg %p1709_p2 }
  0x28   : > { %p1715_p9 = pnand %p1713_p8, %p1710_p3 }
  0x2a   : > { %1718 = shalt.err (!%p1715_p9)
}
  0x2b   : > { %s1719_s21 = scalar_lea.vmem %s1812_s24, 10240  ;;  %p1727_p13 = scmp.lt.s32.totalorder %s1812_s24, %s1812_s24 }
  0x2c   : > { %p1720_p10 = scmp.ne.s32.totalorder %s1812_s24, %s1719_s21  ;;  %p1728_p0 = scmp.lt.s32.totalorder %s1719_s21, %s1719_s21 }
  0x2e   : > { %p1722_p11 = pnand %p1720_p10, %p1680_p7  ;;  %p1729_p1 = por %p1728_p0, %p1727_p13 }
  0x30   : > { %p1723_p12 = pneg %p1722_p11 }
  0x32   : > { %p1730_p4 = pnand %p1729_p1, %p1723_p12 }
  0x34   : > { %1733 = shalt.err (!%p1730_p4)
}
  0x35   : > { %1656 = dma.hbm_to_vmem [thread:$0]  (!%p1808_p5), %s1957_s2, 10240, %s1812_s24, [#allocation6], %s1752_s9, %s1752_s9, %s1753_s10  }
  0x36   : > { %p1965_p6 = scmp.ne.s32.totalorder %s1963_s22, 0 }
  0x37   : > { %p1966_p2 = scmp.eq.s32.totalorder (!%p1965_p6), %s1795_s19, 0 }
  0x38   : > { %213 = sbr.rel (%p1965_p6) target bundleno = 1015 (0x3f7), region = 40 }
  0x3f   : > { %1739 = dma.done.wait (%p1966_p2), [#allocation4], 10240   ;;  %p1967_p7 = pmov %p1966_p2 }
  0x40   : > { %p1968_p3 = pmov %p1966_p2 }
  0x41   : > { %1741 = vsyncadd (%p1967_p7), [#allocation4], 4294957056 }
  0x42   : > { %1743 = dma.done.wait (%p1968_p3), [#allocation6], 10240   ;;  %p1969_p8 = pmov %p1966_p2 }
  0x43   : > { %v279_v0 = vld [vmem:[#allocation3 + $0x80] sm:$0xff]  ;;  %v280_v1 = vld [vmem:[#allocation3 + $0x88] sm:$0xff]  ;;  %v281_v11 = vld [vmem:[#allocation3 + $0x90] sm:$0xff]  ;;  %p244_p5 = scmp.lt.s32.totalorder %s1795_s19, 1  ;;  %s1754_s29 = smov 64   ;;  %vm622_vm0 = vcmask 517120  }
  0x44   : > { %1745 = vsyncadd (%p1969_p8), [#allocation6], 4294957056  ;;  %v311_v2 = vld [vmem:[#allocation3 + $0x180] sm:$0xff]  ;;  %v1457_v3 = vpack.c.bf16 %v280_v1, %v279_v0  ;;  %v312_v4 = vld [vmem:[#allocation3 + $0x188] sm:$0xff]  ;;  %vm713_vm1 = vcmask 1041409   ;;  %vm716_vm2 = vcmask 1042434  }
  0x45   : > { %v263_v5 = vld [vmem:[#allocation3] sm:$0xff]  ;;  %v264_v6 = vld [vmem:[#allocation3 + $0x8] sm:$0xff]  ;;  %v1489_v7 = vpack.c.bf16 %v312_v4, %v311_v2  ;;  %v282_v13 = vld [vmem:[#allocation3 + $0x98] sm:$0xff]  ;;  %s1971_s19 = smov (!%p244_p5, %s1795_s19), 1  ;;  %vm719_vm3 = vcmask 1043459   ;;  %vm722_vm4 = vcmask 1044484  }
  0x46   : > { %v1459_v8 = vpack.c.bf16 %v264_v6, %v263_v5  ;;  %v295_v9 = vld [vmem:[#allocation3 + $0x100] sm:$0xff]  ;;  %v296_v10 = vld [vmem:[#allocation3 + $0x108] sm:$0xff]  ;;  %1458 = vmatprep.subr.bf16.mxu0 %v1457_v3  ;;  %v313_v14 = vld [vmem:[#allocation3 + $0x190] sm:$0xff]  ;;  %v1461_v16 = vpack.c.bf16 %v282_v13, %v281_v11  ;;  %s1641_s22 = smul.u32 24, %s1971_s19  ;;  %vm725_vm5 = vcmask 1045509   ;;  %vm728_vm6 = vcmask 1046534  }
  0x47   : > { %v1491_v12 = vpack.c.bf16 %v296_v10, %v295_v9  ;;  %v314_v15 = vld [vmem:[#allocation3 + $0x198] sm:$0xff]  ;;  %1490 = vmatprep.subr.bf16.mxu1 %v1489_v7  ;;  %v265_v18 = vld [vmem:[#allocation3 + $0x10] sm:$0xff]  ;;  %v283_v23 = vld [vmem:[#allocation3 + $0xa0] sm:$0xff]  ;;  %vm731_vm7 = vcmask 1047559   ;;  %vm734_vm8 = vcmask 523264   ;;  %vm1758_vm9 = vmmov 0  }
  0x48   : > { %1460 = vmatpush3.bf16.msra.mxu0 %v1459_v8  ;;  %v1493_v17 = vpack.c.bf16 %v314_v15, %v313_v14  ;;  %v266_v19 = vld [vmem:[#allocation3 + $0x18] sm:$0xff]  ;;  %v297_v20 = vld [vmem:[#allocation3 + $0x110] sm:$0xff]  ;;  %v284_v24 = vld [vmem:[#allocation3 + $0xa8] sm:$0xff]  ;;  %s1881_s28 = scalar_lea.vmem %s1955_s0, %s1641_s22  ;;  %s1201_s9 = sshll.u32 %s1971_s19, 1  ;;  %vm1114_vm10 = vcmask 1041920  }
  0x49   : > { %1492 = vmatpush3.bf16.msra.mxu1 %v1491_v12  ;;  %v1463_v21 = vpack.c.bf16 %v266_v19, %v265_v18  ;;  %v298_v22 = vld [vmem:[#allocation3 + $0x118] sm:$0xff]  ;;  %1462 = vmatprep.subr.bf16.mxu0 %v1461_v16  ;;  %v1465_v26 = vpack.c.bf16 %v284_v24, %v283_v23  ;;  %v315_v27 = vld [vmem:[#allocation3 + $0x1a0] sm:$0xff]  ;;  %v316_v28 = vld [vmem:[#allocation3 + $0x1a8] sm:$0xff]  ;;  %s252_s12 = scalar_lea.vmem %s1960_s5, %s1201_s9 }
  0x4a   : > { %1494 = vmatprep.subr.bf16.mxu1 %v1493_v17  ;;  %v1495_v25 = vpack.c.bf16 %v298_v22, %v297_v20  ;;  %v267_v29 = vld [vmem:[#allocation3 + $0x20] sm:$0xff]  ;;  %v1497_v30 = vpack.c.bf16 %v316_v28, %v315_v27  ;;  %v268_v31 = vld [vmem:[#allocation3 + $0x28] sm:$0xff]  ;;  %v285_v35 = vld [vmem:[#allocation3 + $0xb0] sm:$0xff] }
  0x4b   : > { %v299_v32 = vld [vmem:[#allocation3 + $0x120] sm:$0xff]  ;;  %v300_v33 = vld [vmem:[#allocation3 + $0x128] sm:$0xff]  ;;  %v1467_v34 = vpack.c.bf16 %v268_v31, %v267_v29  ;;  %v286_v36 = vld [vmem:[#allocation3 + $0xb8] sm:$0xff] }
  0x4c   : > { %1464 = vmatpush3.bf16.msra.mxu0 %v1463_v21  ;;  %v317_v37 = vld [vmem:[#allocation3 + $0x1b0] sm:$0xff]  ;;  %v1499_v38 = vpack.c.bf16 %v300_v33, %v299_v32  ;;  %v1469_v39 = vpack.c.bf16 %v286_v36, %v285_v35  ;;  %v318_v40 = vld [vmem:[#allocation3 + $0x1b8] sm:$0xff]  ;;  %v287_v46 = vld [vmem:[#allocation3 + $0xc0] sm:$0xff] }
  0x4d   : > { %1496 = vmatpush3.bf16.msra.mxu1 %v1495_v25  ;;  %1466 = vmatprep.subr.bf16.mxu0 %v1465_v26  ;;  %v269_v41 = vld [vmem:[#allocation3 + $0x30] sm:$0xff]  ;;  %v270_v42 = vld [vmem:[#allocation3 + $0x38] sm:$0xff]  ;;  %v1501_v43 = vpack.c.bf16 %v318_v40, %v317_v37  ;;  %v288_v47 = vld [vmem:[#allocation3 + $0xc8] sm:$0xff] }
  0x4e   : > { %1498 = vmatprep.subr.bf16.mxu1 %v1497_v30  ;;  %v301_v44 = vld [vmem:[#allocation3 + $0x130] sm:$0xff]  ;;  %v302_v45 = vld [vmem:[#allocation3 + $0x138] sm:$0xff]  ;;  %v319_v48 = vld [vmem:[#allocation3 + $0x1c0] sm:$0xff]  ;;  %v1471_v50 = vpack.c.bf16 %v270_v42, %v269_v41  ;;  %v1473_v52 = vpack.c.bf16 %v288_v47, %v287_v46 }
  0x4f   : > { %v320_v49 = vld [vmem:[#allocation3 + $0x1c8] sm:$0xff]  ;;  %v1503_v51 = vpack.c.bf16 %v302_v45, %v301_v44  ;;  %v271_v53 = vld [vmem:[#allocation3 + $0x40] sm:$0xff]  ;;  %v289_v58 = vld [vmem:[#allocation3 + $0xd0] sm:$0xff] }
  0x50   : > { %1468 = vmatpush3.bf16.msra.mxu0 %v1467_v34  ;;  %v272_v54 = vld [vmem:[#allocation3 + $0x48] sm:$0xff]  ;;  %v303_v55 = vld [vmem:[#allocation3 + $0x140] sm:$0xff]  ;;  %v1505_v56 = vpack.c.bf16 %v320_v49, %v319_v48  ;;  %v290_v59 = vld [vmem:[#allocation3 + $0xd8] sm:$0xff] }
  0x51   : > { %1500 = vmatpush3.bf16.msra.mxu1 %v1499_v38  ;;  %1470 = vmatprep.subr.bf16.mxu0 %v1469_v39  ;;  %v304_v57 = vld [vmem:[#allocation3 + $0x148] sm:$0xff]  ;;  %v321_v60 = vld [vmem:[#allocation3 + $0x1d0] sm:$0xff]  ;;  %v322_v61 = vld [vmem:[#allocation3 + $0x1d8] sm:$0xff]  ;;  %v1475_v62 = vpack.c.bf16 %v272_v54, %v271_v53  ;;  %v1477_v0 = vpack.c.bf16 %v290_v59, %v289_v58 }
  0x52   : > { %1502 = vmatprep.subr.bf16.mxu1 %v1501_v43  ;;  %v1507_v63 = vpack.c.bf16 %v304_v57, %v303_v55  ;;  %v273_v1 = vld [vmem:[#allocation3 + $0x50] sm:$0xff]  ;;  %v274_v2 = vld [vmem:[#allocation3 + $0x58] sm:$0xff]  ;;  %v1509_v4 = vpack.c.bf16 %v322_v61, %v321_v60  ;;  %v291_v6 = vld [vmem:[#allocation3 + $0xe0] sm:$0xff] }
  0x53   : > { %v305_v3 = vld [vmem:[#allocation3 + $0x150] sm:$0xff]  ;;  %v306_v5 = vld [vmem:[#allocation3 + $0x158] sm:$0xff]  ;;  %v292_v7 = vld [vmem:[#allocation3 + $0xe8] sm:$0xff]  ;;  %v1479_v10 = vpack.c.bf16 %v274_v2, %v273_v1 }
  0x54   : > { %1472 = vmatpush3.bf16.msra.mxu0 %v1471_v50  ;;  %v323_v8 = vld [vmem:[#allocation3 + $0x1e0] sm:$0xff]  ;;  %v324_v9 = vld [vmem:[#allocation3 + $0x1e8] sm:$0xff]  ;;  %v1511_v13 = vpack.c.bf16 %v306_v5, %v305_v3  ;;  %v1481_v14 = vpack.c.bf16 %v292_v7, %v291_v6  ;;  %v255_v16 = vld [vmem:[%s1881_s28 + $0x1] sm:$0xff] }
  0x55   : > { %1504 = vmatpush3.bf16.msra.mxu1 %v1503_v51  ;;  %1474 = vmatprep.subr.bf16.mxu0 %v1473_v52  ;;  %v275_v11 = vld [vmem:[#allocation3 + $0x60] sm:$0xff]  ;;  %v276_v12 = vld [vmem:[#allocation3 + $0x68] sm:$0xff]  ;;  %v259_v17 = vld [vmem:[%s1881_s28 + $0x3] sm:$0xff]  ;;  %v1513_v18 = vpack.c.bf16 %v324_v9, %v323_v8 }
  0x56   : > { %1506 = vmatprep.subr.bf16.mxu1 %v1505_v56  ;;  %v307_v15 = vld [vmem:[#allocation3 + $0x160] sm:$0xff]  ;;  %v308_v19 = vld [vmem:[#allocation3 + $0x168] sm:$0xff]  ;;  %v293_v20 = vld [vmem:[#allocation3 + $0xf0] sm:$0xff]  ;;  %407 = vmatprep.mubr.f32.mxu0 %v255_v16  ;;  %v1483_v24 = vpack.c.bf16 %v276_v12, %v275_v11 }
  0x57   : > { %v294_v21 = vld [vmem:[#allocation3 + $0xf8] sm:$0xff]  ;;  %v325_v22 = vld [vmem:[#allocation3 + $0x1f0] sm:$0xff]  ;;  %482 = vmatprep.mubr.f32.mxu1 %v259_v17  ;;  %v1515_v25 = vpack.c.bf16 %v308_v19, %v307_v15  ;;  %v327_v32 = vld [vmem:[#allocation3 + $0x200] sm:$0xff] }
  0x58   : > { %1476 = vmatpush3.bf16.msra.mxu0 %v1475_v62  ;;  %v326_v23 = vld [vmem:[#allocation3 + $0x1f8] sm:$0xff]  ;;  %v1485_v26 = vpack.c.bf16 %v294_v21, %v293_v20  ;;  %v277_v27 = vld [vmem:[#allocation3 + $0x70] sm:$0xff]  ;;  %v328_v33 = vld [vmem:[#allocation3 + $0x208] sm:$0xff] }
  0x59   : > { %1508 = vmatpush3.bf16.msra.mxu1 %v1507_v63  ;;  %1478 = vmatprep.subr.bf16.mxu0 %v1477_v0  ;;  %v278_v28 = vld [vmem:[#allocation3 + $0x78] sm:$0xff]  ;;  %v309_v29 = vld [vmem:[#allocation3 + $0x170] sm:$0xff]  ;;  %v1517_v30 = vpack.c.bf16 %v326_v23, %v325_v22  ;;  %v1521_v36 = vpack.c.bf16 %v328_v33, %v327_v32  ;;  %v331_v42 = vld [vmem:[#allocation3 + $0x220] sm:$0xff] }
  0x5a   : > { %1510 = vmatprep.subr.bf16.mxu1 %v1509_v4  ;;  %v310_v31 = vld [vmem:[#allocation3 + $0x178] sm:$0xff]  ;;  %v1487_v34 = vpack.c.bf16 %v278_v28, %v277_v27  ;;  %v329_v37 = vld [vmem:[#allocation3 + $0x210] sm:$0xff]  ;;  %v332_v43 = vld [vmem:[#allocation3 + $0x228] sm:$0xff] }
  0x5b   : > { %v1519_v35 = vpack.c.bf16 %v310_v31, %v309_v29  ;;  %v330_v38 = vld [vmem:[#allocation3 + $0x218] sm:$0xff]  ;;  %v253_v39 = vld [vmem:[%s1881_s28] sm:$0xff]  ;;  %v1529_v47 = vpack.c.bf16 %v332_v43, %v331_v42  ;;  %v335_v53 = vld [vmem:[#allocation3 + $0x240] sm:$0xff] }
  0x5c   : > { %1480 = vmatpush3.bf16.msra.mxu0 %v1479_v10  ;;  %v257_v40 = vld [vmem:[%s1881_s28 + $0x2] sm:$0xff]  ;;  %v1525_v41 = vpack.c.bf16 %v330_v38, %v329_v37  ;;  %v260_v45 = vld [vmem:[%s1881_s28 + $0xb] sm:$0xff]  ;;  %v336_v54 = vld [vmem:[#allocation3 + $0x248] sm:$0xff] }
  0x5d   : > { %1512 = vmatpush3.bf16.msra.mxu1 %v1511_v13  ;;  %1482 = vmatprep.subr.bf16.mxu0 %v1481_v14  ;;  %v256_v44 = vld [vmem:[%s1881_s28 + $0x9] sm:$0xff]  ;;  %v333_v49 = vld [vmem:[#allocation3 + $0x230] sm:$0xff]  ;;  %v1537_v55 = vpack.c.bf16 %v336_v54, %v335_v53  ;;  %v340_v60 = vld [vmem:[#allocation3 + $0x268] sm:$0xff] }
  0x5e   : > { %1514 = vmatprep.subr.bf16.mxu1 %v1513_v18  ;;  %v254_v46 = vld [vmem:[%s1881_s28 + $0x8] sm:$0xff]  ;;  %v337_v56 = vld [vmem:[#allocation3 + $0x250] sm:$0xff]  ;;  %v339_v59 = vld [vmem:[#allocation3 + $0x260] sm:$0xff] }
  0x5f   : > { %v258_v48 = vld [vmem:[%s1881_s28 + $0xa] sm:$0xff]  ;;  %v1545_v61 = vpack.c.bf16 %v340_v60, %v339_v59  ;;  %v341_v62 = vld [vmem:[#allocation3 + $0x270] sm:$0xff]  ;;  %v758_v17 = vld [vmem:[#allocation5 + $0x88] sm:$0xff] }
  0x60   : > { %1484 = vmatpush3.bf16.msra.mxu0 %v1483_v24  ;;  %v334_v50 = vld [vmem:[#allocation3 + $0x238] sm:$0xff]  ;;  %v757_v16 = vld [vmem:[#allocation5 + $0x80] sm:$0xff]  ;;  %v742_v21 = vld [vmem:[#allocation5 + $0x8] sm:$0xff] }
  0x61   : > { %1516 = vmatpush3.bf16.msra.mxu1 %v1515_v25  ;;  %1486 = vmatprep.subr.bf16.mxu0 %v1485_v26  ;;  %v261_v51 = vld [vmem:[%s1881_s28 + $0x4] sm:$0xff]  ;;  %v1533_v52 = vpack.c.bf16 %v334_v50, %v333_v49  ;;  %v262_v1 = vld [vmem:[%s1881_s28 + $0xc] sm:$0xff]  ;;  %v1553_v19 = vpack.c.bf16 %v758_v17, %v757_v16  ;;  %v790_v26 = vld [vmem:[#allocation5 + $0x188] sm:$0xff] }
  0x62   : > { %1518 = vmatprep.subr.bf16.mxu1 %v1517_v30  ;;  %v338_v57 = vld [vmem:[#allocation3 + $0x258] sm:$0xff]  ;;  %v741_v20 = vld [vmem:[#allocation5] sm:$0xff]  ;;  %v774_v28 = vld [vmem:[#allocation5 + $0x108] sm:$0xff] }
  0x63   : > { %v1541_v58 = vpack.c.bf16 %v338_v57, %v337_v56  ;;  %v342_v63 = vld [vmem:[#allocation3 + $0x278] sm:$0xff]  ;;  %v789_v22 = vld [vmem:[#allocation5 + $0x180] sm:$0xff]  ;;  %v1555_v25 = vpack.c.bf16 %v742_v21, %v741_v20  ;;  %v759_v32 = vld [vmem:[#allocation5 + $0x90] sm:$0xff] }
  0x64   : > { %1488 = vmatpush3.bf16.msra.mxu0 %v1487_v34  ;;  %v1549_v0 = vpack.c.bf16 %v342_v63, %v341_v62  ;;  %v773_v27 = vld [vmem:[#allocation5 + $0x100] sm:$0xff]  ;;  %v1585_v30 = vpack.c.bf16 %v790_v26, %v789_v22  ;;  %v760_v33 = vld [vmem:[#allocation5 + $0x98] sm:$0xff]  ;;  %v791_v37 = vld [vmem:[#allocation5 + $0x190] sm:$0xff] }
  0x65   : > { %1520 = vmatpush3.bf16.msra.mxu1 %v1519_v35  ;;  %1522 = vmatprep.subr.bf16.mxu0 %v1521_v36  ;;  %v1587_v31 = vpack.c.bf16 %v774_v28, %v773_v27  ;;  %v1557_v34 = vpack.c.bf16 %v760_v33, %v759_v32  ;;  %v743_v35 = vld [vmem:[#allocation5 + $0x10] sm:$0xff]  ;;  %v793_v49 = vld [vmem:[#allocation5 + $0x1a0] sm:$0xff]  ;;  %v778_v53 = vld [vmem:[#allocation5 + $0x128] sm:$0xff] }
  0x66   : > { %1554 = vmatprep.subr.bf16.mxu1 %v1553_v19  ;;  %v763_v56 = vld [vmem:[#allocation5 + $0xb0] sm:$0xff]  ;;  %v764_v57 = vld [vmem:[#allocation5 + $0xb8] sm:$0xff]  ;;  %v770_v32 = vld [vmem:[#allocation5 + $0xe8] sm:$0xff] }
  0x67   : > { %408 = vmatmul.mubr.f32.vlgmr.msra.gmra.mrb[0].mxu0 %v253_v39  ;;  %v792_v39 = vld [vmem:[#allocation5 + $0x198] sm:$0xff]  ;;  %v747_v59 = vld [vmem:[#allocation5 + $0x30] sm:$0xff] }
  0x68   : > { %483 = vmatmul.mubr.f32.vlgmr.msra.gmra.mrb[0].mxu1 %v257_v40  ;;  %1524 = vmatpush3.bf16.msra.mxu0 %v1521_v36  ;;  %v744_v36 = vld [vmem:[#allocation5 + $0x18] sm:$0xff]  ;;  %v775_v40 = vld [vmem:[#allocation5 + $0x110] sm:$0xff]  ;;  %v1589_v42 = vpack.c.bf16 %v792_v39, %v791_v37  ;;  %v785_v39 = vld [vmem:[#allocation5 + $0x160] sm:$0xff] }
  0x69   : > { %1526 = vmatprep.subr.bf16.mxu0 %v1525_v41  ;;  %412 = vmatprep.mubr.f32.mxu0 %v256_v44  ;;  %v1559_v38 = vpack.c.bf16 %v744_v36, %v743_v35  ;;  %v761_v44 = vld [vmem:[#allocation5 + $0xa0] sm:$0xff]  ;;  %v748_v60 = vld [vmem:[#allocation5 + $0x38] sm:$0xff]  ;;  %v767_v17 = vld [vmem:[#allocation5 + $0xd0] sm:$0xff] }
  0x6a   : > { %487 = vmatprep.mubr.f32.mxu1 %v260_v45  ;;  %1556 = vmatpush3.bf16.msra.mxu1 %v1555_v25  ;;  %v762_v45 = vld [vmem:[#allocation5 + $0xa8] sm:$0xff]  ;;  %v1567_v62 = vpack.c.bf16 %v748_v60, %v747_v59  ;;  %v796_v63 = vld [vmem:[#allocation5 + $0x1b8] sm:$0xff]  ;;  %v751_v20 = vld [vmem:[#allocation5 + $0x50] sm:$0xff] }
  0x6b   : > { %413 = vmatmul.mubr.f32.gmra.mrb[2].mxu0 %v254_v46  ;;  %1558 = vmatprep.subr.bf16.mxu1 %v1557_v34  ;;  %v1561_v46 = vpack.c.bf16 %v762_v45, %v761_v44  ;;  %v752_v21 = vld [vmem:[#allocation5 + $0x58] sm:$0xff]  ;;  %v799_v22 = vld [vmem:[#allocation5 + $0x1d0] sm:$0xff]  ;;  %v753_v34 = vld [vmem:[#allocation5 + $0x60] sm:$0xff] }
  0x6c   : > { %1528 = vmatpush3.bf16.msra.mxu0 %v1525_v41  ;;  %488 = vmatmul.mubr.f32.gmra.mrb[2].mxu1 %v258_v48  ;;  %v776_v41 = vld [vmem:[#allocation5 + $0x118] sm:$0xff]  ;;  %v746_v48 = vld [vmem:[#allocation5 + $0x28] sm:$0xff]  ;;  %v783_v26 = vld [vmem:[#allocation5 + $0x150] sm:$0xff] }
  0x6d   : > { %1530 = vmatprep.subr.bf16.mxu0 %v1529_v47  ;;  %1419 = vmatprep.mubr.f32.mxu0 %v261_v51  ;;  %v1591_v43 = vpack.c.bf16 %v776_v41, %v775_v40  ;;  %v794_v51 = vld [vmem:[#allocation5 + $0x1a8] sm:$0xff]  ;;  %v800_v25 = vld [vmem:[#allocation5 + $0x1d8] sm:$0xff]  ;;  %v801_v36 = vld [vmem:[#allocation5 + $0x1e0] sm:$0xff] }
  0x6e   : > { %1560 = vmatpush3.bf16.msra.mxu1 %v1559_v38  ;;  %v1593_v54 = vpack.c.bf16 %v794_v51, %v793_v49  ;;  %v784_v27 = vld [vmem:[#allocation5 + $0x158] sm:$0xff]  ;;  %v1605_v28 = vpack.c.bf16 %v800_v25, %v799_v22  ;;  %v754_v35 = vld [vmem:[#allocation5 + $0x68] sm:$0xff]  ;;  %v755_v45 = vld [vmem:[#allocation5 + $0x70] sm:$0xff] }
  0x6f   : > { %1562 = vmatprep.subr.bf16.mxu1 %v1561_v46  ;;  %v1579_v37 = vpack.c.bf16 %v754_v35, %v753_v34  ;;  %v802_v38 = vld [vmem:[#allocation5 + $0x1e8] sm:$0xff]  ;;  %v772_v44 = vld [vmem:[#allocation5 + $0xf8] sm:$0xff] }
  0x70   : > { %1532 = vmatpush3.bf16.msra.mxu0 %v1529_v47  ;;  %v745_v47 = vld [vmem:[#allocation5 + $0x20] sm:$0xff]  ;;  %v786_v40 = vld [vmem:[#allocation5 + $0x168] sm:$0xff]  ;;  %v1609_v41 = vpack.c.bf16 %v802_v38, %v801_v36  ;;  %v804_v49 = vld [vmem:[#allocation5 + $0x1f8] sm:$0xff] }
  0x71   : > { %1534 = vmatprep.subr.bf16.mxu0 %v1533_v52  ;;  %v1563_v50 = vpack.c.bf16 %v746_v48, %v745_v47  ;;  %v756_v47 = vld [vmem:[#allocation5 + $0x78] sm:$0xff]  ;;  %v803_v48 = vld [vmem:[#allocation5 + $0x1f0] sm:$0xff] }
  0x72   : > { %v1613_v51 = vpack.c.bf16 %v804_v49, %v803_v48 }
  0x73   : > { %1564 = vmatpush3.bf16.msra.mxu1 %v1563_v50  ;;  %v1583_v50 = vpack.c.bf16 %v756_v47, %v755_v45  ;;  %v1202_v47 = vld [vmem:[%s1958_s3] ss:$0 sm:$0xff] }
  0x74   : > { %1536 = vmatpush3.bf16.msra.mxu0 %v1533_v52  ;;  %v777_v52 = vld [vmem:[#allocation5 + $0x120] sm:$0xff] }
  0x75   : > { %1538 = vmatprep.subr.bf16.mxu0 %v1537_v55 }
  0x78   : > { %1540 = vmatpush3.bf16.msra.mxu0 %v1537_v55  ;;  %v1595_v55 = vpack.c.bf16 %v778_v53, %v777_v52  ;;  %v787_v52 = vld [vmem:[#allocation5 + $0x170] sm:$0xff]  ;;  %v788_v53 = vld [vmem:[#allocation5 + $0x178] sm:$0xff] }
  0x79   : > { %1542 = vmatprep.subr.bf16.mxu0 %v1541_v58 }
  0x7c   : > { %1544 = vmatpush3.bf16.msra.mxu0 %v1541_v58  ;;  %v1565_v58 = vpack.c.bf16 %v764_v57, %v763_v56  ;;  %v1757_v56 = vmov 1983009808  }
  0x7d   : > { %1546 = vmatprep.subr.bf16.mxu0 %v1545_v61  ;;  %v582_v57 = vunpack.c.l.s4 %v1757_v56 }
  0x7e   : > { %1566 = vmatprep.subr.bf16.mxu1 %v1565_v58  ;;  %v584_v58 = vlaneseq }
  0x7f   : > { %1568 = vmatpush3.bf16.msra.mxu1 %v1567_v62  ;;  %v583_v59 = vunpack.c.0.s8 %v582_v57 }
  0x80   : > { %1548 = vmatpush3.bf16.msra.mxu0 %v1545_v61  ;;  %v795_v61 = vld [vmem:[#allocation5 + $0x1b0] sm:$0xff]  ;;  %v585_v60 = vshrl.u32 %v584_v58, 7 }
  0x81   : > { %1550 = vmatprep.subr.bf16.mxu0 %v1549_v0 }
  0x84   : > { %1552 = vmatpush3.bf16.msra.mxu0 %v1549_v0  ;;  %v779_v0 = vld [vmem:[#allocation5 + $0x130] sm:$0xff] }
  0x85   : > { %1586 = vmatprep.subr.bf16.mxu0 %v1585_v30  ;;  %v1607_v30 = vpack.c.bf16 %v784_v27, %v783_v26 }
  0x87   : > { %1420 = vmatmul.mubr.f32.vlgmr.msra.gmra.mrb[4].mxu0 %v262_v1  ;;  %v780_v1 = vld [vmem:[#allocation5 + $0x138] sm:$0xff] }
  0x88   : > { %1588 = vmatpush3.bf16.msra.mxu0 %v1587_v31  ;;  %v769_v31 = vld [vmem:[#allocation5 + $0xe0] sm:$0xff] }
  0x89   : > { %1590 = vmatprep.subr.bf16.mxu0 %v1589_v42  ;;  %v1577_v33 = vpack.c.bf16 %v770_v32, %v769_v31  ;;  %v1611_v42 = vpack.c.bf16 %v786_v40, %v785_v39 }
  0x8c   : > { %1592 = vmatpush3.bf16.msra.mxu0 %v1591_v43  ;;  %v771_v43 = vld [vmem:[#allocation5 + $0xf0] sm:$0xff] }
  0x8d   : > { %1594 = vmatprep.subr.bf16.mxu0 %v1593_v54  ;;  %v1581_v46 = vpack.c.bf16 %v772_v44, %v771_v43  ;;  %v1615_v54 = vpack.c.bf16 %v788_v53, %v787_v52 }
  0x90   : > { %1596 = vmatpush3.bf16.msra.mxu0 %v1595_v55  ;;  %v1756_v55 = vmov 0.0|0.0  }
 0x13a   : > { %v1238_v2 = vpop.f32.mrb[0].mxu0 }
 0x13b   : > { %v1276_v3 = vpop.f32.mrb[0].mxu1  ;;  %v1239_v4 = vpop.f32.mrb[1].mxu0 }
 0x13c   : > { %v1240_v5 = vadd.f32 %v1239_v4, %v1238_v2  ;;  %v1277_v6 = vpop.f32.mrb[1].mxu1  ;;  %v1597_v2 = vpack.c.bf16 %v796_v63, %v795_v61  ;;  %v765_v4 = vld [vmem:[#allocation5 + $0xc0] sm:$0xff]  ;;  %v1904_v61 = vsub.s32 %v583_v59, %v585_v60 }
 0x13d   : > { %v1278_v7 = vadd.f32 %v1277_v6, %v1276_v3  ;;  %v1599_v3 = vpack.c.bf16 %v780_v1, %v779_v0 }
 0x13e   : > { %v1241_v8 = vpop.f32.mrb[2].mxu0  ;;  %1598 = vmatprep.subr.bf16.mxu0 %v1597_v2 }
 0x13f   : > { %v1279_v9 = vpop.f32.mrb[2].mxu1  ;;  %v1242_v10 = vpop.f32.mrb[3].mxu0  ;;  %v485_v11 = vadd.f32 %v1278_v7, %v1240_v5  ;;  %v766_v5 = vld [vmem:[#allocation5 + $0xc8] sm:$0xff]  ;;  %v749_v7 = vld [vmem:[#allocation5 + $0x40] sm:$0xff]  ;;  %1600 = vmatpush3.bf16.msra.mxu0 %v1599_v3 }
 0x140   : > { %v1243_v12 = vadd.f32 %v1242_v10, %v1241_v8  ;;  %v1280_v13 = vpop.f32.mrb[3].mxu1  ;;  %v1569_v6 = vpack.c.bf16 %v766_v5, %v765_v4  ;;  %v750_v8 = vld [vmem:[#allocation5 + $0x48] sm:$0xff] }
 0x141   : > { %v1281_v14 = vadd.f32 %v1280_v13, %v1279_v9  ;;  %v797_v9 = vld [vmem:[#allocation5 + $0x1c0] sm:$0xff]  ;;  %v1571_v10 = vpack.c.bf16 %v750_v8, %v749_v7  ;;  %v782_v13 = vld [vmem:[#allocation5 + $0x148] sm:$0xff] }
 0x142   : > { %1570 = vmatprep.subr.bf16.mxu1 %v1569_v6 }
 0x143   : > { %v490_v15 = vadd.f32 %v1281_v14, %v1243_v12  ;;  %v781_v12 = vld [vmem:[#allocation5 + $0x140] sm:$0xff]  ;;  %v1755_v14 = vmov 0.0   ;;  %1572 = vmatpush3.bf16.msra.mxu1 %v1571_v10 }
 0x144   : > { %702 = vst [vmem:[#allocation2] sm:$0xff] %v1755_v14  ;;  %703 = vst [vmem:[#allocation2 + $0x8] sm:$0xff] %v1755_v14  ;;  %v1603_v16 = vpack.c.bf16 %v782_v13, %v781_v12 }
 0x15a   : > { %v1421_v18 = vpop.f32.mrb[4].mxu0 }
 0x15b   : > { %v1893_v23 = vadd.f32 %v1421_v18, %v490_v15  ;;  %v559_v24 = vpop.f32.mrb[5].mxu0  ;;  %v768_v18 = vld [vmem:[#allocation5 + $0xd8] sm:$0xff] }
 0x15c   : > { %v1895_v29 = vadd.f32 %v559_v24, %v485_v11  ;;  %v798_v11 = vld [vmem:[#allocation5 + $0x1c8] sm:$0xff]  ;;  %v1573_v19 = vpack.c.bf16 %v768_v18, %v767_v17  ;;  %v1575_v24 = vpack.c.bf16 %v752_v21, %v751_v20 }
 0x15d   : > { %v1601_v15 = vpack.c.bf16 %v798_v11, %v797_v9 }
 0x15e   : > { %570 = vrot.lane.b32.xlu0 %v1895_v29, %s1754_s29  ;;  %1574 = vmatprep.subr.bf16.mxu1 %v1573_v19 }
 0x15f   : > { %1602 = vmatprep.subr.bf16.mxu0 %v1601_v15  ;;  %1576 = vmatpush3.bf16.msra.mxu1 %v1575_v24 }
 0x160   : > { %1604 = vmatpush3.bf16.msra.mxu0 %v1603_v16  ;;  %1578 = vmatprep.subr.bf16.mxu1 %v1577_v33 }
 0x161   : > { %1606 = vmatprep.subr.bf16.mxu0 %v1605_v28 }
 0x162   : > { %572 = vrot.lane.b32.xlu0 %v1893_v23, %s1754_s29 }
 0x163   : > { %1580 = vmatpush3.bf16.msra.mxu1 %v1579_v37 }
 0x164   : > { %1608 = vmatpush3.bf16.msra.mxu0 %v1607_v30  ;;  %1582 = vmatprep.subr.bf16.mxu1 %v1581_v46 }
 0x165   : > { %1610 = vmatprep.subr.bf16.mxu0 %v1609_v41 }
 0x167   : > { %1584 = vmatpush3.bf16.msra.mxu1 %v1583_v50 }
 0x168   : > { %1612 = vmatpush3.bf16.msra.mxu0 %v1611_v42  ;;  %1617 = vmatprep.subr.bf16.mxu1 %v1756_v55 }
 0x169   : > { %1614 = vmatprep.subr.bf16.mxu0 %v1613_v51 }
 0x16c   : > { %1616 = vmatpush3.bf16.msra.mxu0 %v1615_v54 }
 0x1d0   : > { %v571_v62 = vpop.permute.xlu0 %570 }
 0x1d1   : > { %v576_v63 = vmax.f32 %v1895_v29, %v571_v62 }
 0x1d3   : > { %v580_v0 = vcombine.high %v576_v63, %v576_v63  ;;  %v587_v1 = vrot.slane %v576_v63, %v1904_v61 }
 0x1d4   : > { %v573_v2 = vpop.permute.xlu0 %572 }
 0x1d5   : > { %v594_v3 = vrot.slane %v580_v0, %v1904_v61  ;;  %v595_v4 = vcombine.high %v587_v1, %v587_v1  ;;  %v623_v5 = vsel %vm622_vm0, %v587_v1, -inf  ;;  %v577_v6 = vmax.f32 %v1893_v23, %v573_v2 }
 0x1d6   : > { %v624_v7 = vrot.slane %v623_v5, 4 }
 0x1d7   : > { %v596_v8 = vcombine.high %v594_v3, %v594_v3  ;;  %v630_v9 = vsel %vm622_vm0, %v595_v4, -inf  ;;  %v637_v10 = vsel %vm622_vm0, %v594_v3, -inf  ;;  %v597_v11 = vcombine.high %v577_v6, %v577_v6 }
 0x1d8   : > { %v625_v29 = vmax.f32 %v623_v5, %v624_v7  ;;  %v631_v12 = vrot.slane %v630_v9, 4  ;;  %v638_v13 = vrot.slane %v637_v10, 4  ;;  %v604_v15 = vrot.slane %v577_v6, %v1904_v61 }
 0x1d9   : > { %v644_v16 = vsel %vm622_vm0, %v596_v8, -inf  ;;  %v611_v17 = vrot.slane %v597_v11, %v1904_v61 }
 0x1da   : > { %v626_v18 = vrot.slane %v625_v29, 2  ;;  %v632_v19 = vmax.f32 %v630_v9, %v631_v12  ;;  %v639_v20 = vmax.f32 %v637_v10, %v638_v13  ;;  %v645_v23 = vrot.slane %v644_v16, 4 }
 0x1db   : > { %v612_v21 = vcombine.high %v604_v15, %v604_v15  ;;  %v613_v22 = vcombine.high %v611_v17, %v611_v17  ;;  %v651_v24 = vsel %vm622_vm0, %v604_v15, -inf  ;;  %v665_v25 = vsel %vm622_vm0, %v611_v17, -inf }
 0x1dc   : > { %v627_v26 = vmax.f32 %v625_v29, %v626_v18  ;;  %v633_v27 = vrot.slane %v632_v19, 2  ;;  %v640_v28 = vrot.slane %v639_v20, 2  ;;  %v646_v30 = vmax.f32 %v644_v16, %v645_v23 }
 0x1dd   : > { %v652_v31 = vrot.slane %v651_v24, 4  ;;  %v658_v32 = vsel %vm622_vm0, %v612_v21, -inf  ;;  %v666_v33 = vrot.slane %v665_v25, 4  ;;  %v672_v34 = vsel %vm622_vm0, %v613_v22, -inf }
 0x1de   : > { %v628_v35 = vrot.slane %v627_v26, 1  ;;  %v634_v36 = vmax.f32 %v632_v19, %v633_v27  ;;  %v641_v37 = vmax.f32 %v639_v20, %v640_v28  ;;  %v647_v38 = vrot.slane %v646_v30, 2 }
 0x1df   : > { %v653_v39 = vmax.f32 %v651_v24, %v652_v31  ;;  %v659_v40 = vrot.slane %v658_v32, 4  ;;  %v667_v41 = vmax.f32 %v665_v25, %v666_v33  ;;  %v673_v42 = vrot.slane %v672_v34, 4 }
 0x1e0   : > { %v629_v43 = vmax.f32 %v627_v26, %v628_v35  ;;  %v635_v44 = vrot.slane %v634_v36, 1  ;;  %v642_v45 = vrot.slane %v641_v37, 1  ;;  %v648_v46 = vmax.f32 %v646_v30, %v647_v38 }
 0x1e1   : > { %v654_v48 = vrot.slane %v653_v39, 2  ;;  %v660_v49 = vmax.f32 %v658_v32, %v659_v40  ;;  %v668_v50 = vrot.slane %v667_v41, 2  ;;  %v674_v51 = vmax.f32 %v672_v34, %v673_v42  ;;  %v806_v40 = vld [vmem:[#allocation5 + $0x208] sm:$0xff]  ;;  %v807_v42 = vld [vmem:[#allocation5 + $0x210] sm:$0xff] }
 0x1e2   : > { %v636_v52 = vmax.f32 %v634_v36, %v635_v44  ;;  %v643_v53 = vmax.f32 %v641_v37, %v642_v45  ;;  %v649_v54 = vrot.slane %v648_v46, 1  ;;  %v686_v62 = vadd.f32 %v1202_v47, %v629_v43  ;;  %v808_v43 = vld [vmem:[#allocation5 + $0x218] sm:$0xff] }
 0x1e3   : > { %v655_v56 = vmax.f32 %v653_v39, %v654_v48  ;;  %v661_v57 = vrot.slane %v660_v49, 2  ;;  %v669_v58 = vmax.f32 %v667_v41, %v668_v50  ;;  %v675_v59 = vrot.slane %v674_v51, 2  ;;  %v805_v39 = vld [vmem:[#allocation5 + $0x200] sm:$0xff]  ;;  %v810_v50 = vld [vmem:[#allocation5 + $0x228] sm:$0xff] }
 0x1e4   : > { %v650_v60 = vmax.f32 %v648_v46, %v649_v54  ;;  %v687_v63 = vadd.f32 %v1202_v47, %v636_v52  ;;  %v688_v0 = vadd.f32 %v1202_v47, %v643_v53  ;;  %v694_v29 = vmax.f32 %v686_v62, 0.0  ;;  %v811_v52 = vld [vmem:[#allocation5 + $0x230] sm:$0xff]  ;;  %v812_v53 = vld [vmem:[#allocation5 + $0x238] sm:$0xff]  ;;  %v817_v62 = vld [vmem:[#allocation5 + $0x260] sm:$0xff] }
 0x1e5   : > { %v656_v1 = vrot.slane %v655_v56, 1  ;;  %v662_v2 = vmax.f32 %v660_v49, %v661_v57  ;;  %v670_v3 = vrot.slane %v669_v58, 1  ;;  %v676_v4 = vmax.f32 %v674_v51, %v675_v59  ;;  %v809_v49 = vld [vmem:[#allocation5 + $0x220] sm:$0xff]  ;;  %v814_v57 = vld [vmem:[#allocation5 + $0x248] sm:$0xff]  ;;  %v816_v59 = vld [vmem:[#allocation5 + $0x258] sm:$0xff] }
 0x1e6   : > { %v689_v5 = vadd.f32 %v1202_v47, %v650_v60  ;;  %v695_v6 = vmax.f32 %v687_v63, 0.0  ;;  %v696_v7 = vmax.f32 %v688_v0, 0.0  ;;  %v1618_v41 = vpack.c.bf16 %v806_v40, %v805_v39  ;;  %v818_v63 = vld [vmem:[#allocation5 + $0x268] sm:$0xff] }
 0x1e7   : > { %v657_v8 = vmax.f32 %v655_v56, %v656_v1  ;;  %v663_v9 = vrot.slane %v662_v2, 1  ;;  %v671_v10 = vmax.f32 %v669_v58, %v670_v3  ;;  %v677_v11 = vrot.slane %v676_v4, 1  ;;  %v813_v56 = vld [vmem:[#allocation5 + $0x240] sm:$0xff]  ;;  %v819_v1 = vld [vmem:[#allocation5 + $0x270] sm:$0xff] }
 0x1e8   : > { %v697_v12 = vmax.f32 %v689_v5, 0.0  ;;  %v712_v13 = vrot.slane %v695_v6, 7  ;;  %v715_v15 = vrot.slane %v696_v7, 6  ;;  %v1621_v48 = vpack.c.bf16 %v808_v43, %v807_v42 }
 0x1e9   : > { %v664_v16 = vmax.f32 %v662_v2, %v663_v9  ;;  %v678_v17 = vmax.f32 %v676_v4, %v677_v11  ;;  %v690_v18 = vadd.f32 %v1202_v47, %v657_v8  ;;  %v692_v19 = vadd.f32 %v1202_v47, %v671_v10  ;;  %v820_v2 = vld [vmem:[#allocation5 + $0x278] sm:$0xff] }
 0x1ea   : > { %v714_v20 = vsel %vm713_vm1, %v712_v13, %v694_v29  ;;  %v718_v23 = vrot.slane %v697_v12, 5  ;;  %v1624_v51 = vpack.c.bf16 %v810_v50, %v809_v49  ;;  %v1627_v54 = vpack.c.bf16 %v812_v53, %v811_v52 }
 0x1eb   : > { %v717_v21 = vsel %vm716_vm2, %v715_v15, %v714_v20  ;;  %v691_v22 = vadd.f32 %v1202_v47, %v664_v16  ;;  %v693_v24 = vadd.f32 %v1202_v47, %v678_v17  ;;  %v698_v25 = vmax.f32 %v690_v18, 0.0 }
 0x1ec   : > { %v720_v26 = vsel %vm719_vm3, %v718_v23, %v717_v21  ;;  %v700_v27 = vmax.f32 %v692_v19, 0.0  ;;  %v1630_v58 = vpack.c.bf16 %v814_v57, %v813_v56  ;;  %v1636_v0 = vpack.c.bf16 %v818_v63, %v817_v62 }
 0x1ed   : > { %v699_v28 = vmax.f32 %v691_v22, 0.0  ;;  %v701_v30 = vmax.f32 %v693_v24, 0.0  ;;  %v721_v31 = vrot.slane %v698_v25, 4  ;;  %v1639_v3 = vpack.c.bf16 %v820_v2, %v819_v1 }
 0x1ee   : > { %v727_v32 = vrot.slane %v700_v27, 2 }
 0x1ef   : > { %v723_v33 = vsel %vm722_vm4, %v721_v31, %v720_v26  ;;  %v724_v34 = vrot.slane %v699_v28, 3  ;;  %v730_v35 = vrot.slane %v701_v30, 1 }
 0x1f1   : > { %v726_v36 = vsel %vm725_vm5, %v724_v34, %v723_v33 }
 0x1f2   : > { %v729_v37 = vsel %vm728_vm6, %v727_v32, %v726_v36 }
 0x1f3   : > { %v732_v38 = vsel %vm731_vm7, %v730_v35, %v729_v37 }
 0x1f4   : > { %735 = vst.msk [vmem:[#allocation2 + $0x2] sm:$0xff] %vm734_vm8, %v732_v38 }
 0x1fb   : > { %v737_v44 = vld [vmem:[#allocation2 + $0x1] sm:$0xff] }
 0x1fc   : > { %v739_v45 = vld [vmem:[#allocation2 + $0x3] sm:$0xff]  ;;  %885 = vmatprep.mubr.f32.mxu1 %v737_v44 }
 0x1fd   : > { %v736_v46 = vld [vmem:[#allocation2] sm:$0xff]  ;;  %955 = vmatprep.mubr.f32.mxu0 %v739_v45 }
 0x1fe   : > { %v738_v47 = vld [vmem:[#allocation2 + $0x2] sm:$0xff]  ;;  %886 = vmatmul.mubr.f32.vlgmr.msra.gmra.mrb[4].mxu1 %v736_v46  ;;  %v1203_v45 = vld [vmem:[%s1959_s4] ss:$0 sm:$0xff] }
 0x1ff   : > { %956 = vmatmul.mubr.f32.vlgmr.msra.gmra.mrb[6].mxu0 %v738_v47  ;;  %1619 = vmatpush3.bf16.msra.mxu1 %v1618_v41  ;;  %v740_v4 = vld [vmem:[#allocation2 + $0x4] sm:$0xff] }
 0x200   : > { %1454 = vmatprep.mubr.msk.f32.mxu1 %vm1758_vm9, %v1755_v14  ;;  %1620 = vmatprep.subr.bf16.mxu1 %v1756_v55  ;;  %v815_v14 = vld [vmem:[#allocation5 + $0x250] sm:$0xff] }
 0x201   : > { %v1633_v60 = vpack.c.bf16 %v816_v59, %v815_v14 }
 0x203   : > { %1622 = vmatpush3.bf16.msra.mxu1 %v1621_v48 }
 0x204   : > { %1623 = vmatprep.subr.bf16.mxu1 %v1756_v55 }
 0x207   : > { %1625 = vmatpush3.bf16.msra.mxu1 %v1624_v51 }
 0x208   : > { %1626 = vmatprep.subr.bf16.mxu1 %v1756_v55 }
 0x20b   : > { %1628 = vmatpush3.bf16.msra.mxu1 %v1627_v54 }
 0x20c   : > { %1629 = vmatprep.subr.bf16.mxu1 %v1756_v55 }
 0x20f   : > { %1631 = vmatpush3.bf16.msra.mxu1 %v1630_v58 }
 0x210   : > { %1632 = vmatprep.subr.bf16.mxu1 %v1756_v55 }
 0x213   : > { %1634 = vmatpush3.bf16.msra.mxu1 %v1633_v60 }
 0x214   : > { %1635 = vmatprep.subr.bf16.mxu1 %v1756_v55 }
 0x217   : > { %1637 = vmatpush3.bf16.msra.mxu1 %v1636_v0 }
 0x218   : > { %1638 = vmatprep.subr.bf16.mxu1 %v1756_v55 }
 0x21b   : > { %1640 = vmatpush3.bf16.msra.mxu1 %v1639_v3 }
 0x21e   : > { %1455 = vmatmul.mubr.f32.vlgmr.msra.gmra.mrb[6].mxu1 %v740_v4 }
 0x2d1   : > { %v1332_v5 = vpop.f32.mrb[4].mxu1 }
 0x2d2   : > { %v1367_v6 = vpop.f32.mrb[6].mxu0  ;;  %v1333_v7 = vpop.f32.mrb[5].mxu1 }
 0x2d3   : > { %v1368_v8 = vpop.f32.mrb[7].mxu0  ;;  %v1334_v9 = vadd.f32 %v1333_v7, %v1332_v5 }
 0x2d4   : > { %v1369_v10 = vadd.f32 %v1368_v8, %v1367_v6 }
 0x2d6   : > { %v958_v11 = vadd.f32 %v1369_v10, %v1334_v9 }
 0x2f1   : > { %v1027_v29 = vpop.f32.mrb[6].mxu1 }
 0x2f2   : > { %v1028_v12 = vadd.f32 %v1027_v29, %v958_v11  ;;  %v1456_v13 = vpop.f32.mrb[7].mxu1 }
 0x2f4   : > { %1032 = vrot.lane.b32.xlu1 %v1028_v12, %s1754_s29 }
 0x366   : > { %v1033_v15 = vpop.permute.xlu1 %1032 }
 0x367   : > { %v1035_v16 = vmax.f32 %v1028_v12, %v1033_v15 }
 0x369   : > { %v1037_v17 = vcombine.high %v1035_v16, %v1035_v16  ;;  %v1044_v55 = vrot.slane %v1035_v16, %v1904_v61 }
 0x36b   : > { %v1051_v18 = vrot.slane %v1037_v17, %v1904_v61  ;;  %v1052_v19 = vcombine.high %v1044_v55, %v1044_v55  ;;  %v1058_v20 = vsel %vm622_vm0, %v1044_v55, -inf }
 0x36c   : > { %v1059_v23 = vrot.slane %v1058_v20, 4 }
 0x36d   : > { %v1053_v21 = vcombine.high %v1051_v18, %v1051_v18  ;;  %v1065_v22 = vsel %vm622_vm0, %v1052_v19, -inf  ;;  %v1072_v24 = vsel %vm622_vm0, %v1051_v18, -inf }
 0x36e   : > { %v1060_v25 = vmax.f32 %v1058_v20, %v1059_v23  ;;  %v1066_v26 = vrot.slane %v1065_v22, 4  ;;  %v1073_v27 = vrot.slane %v1072_v24, 4 }
 0x36f   : > { %v1079_v28 = vsel %vm622_vm0, %v1053_v21, -inf }
 0x370   : > { %v1061_v30 = vrot.slane %v1060_v25, 2  ;;  %v1067_v31 = vmax.f32 %v1065_v22, %v1066_v26  ;;  %v1074_v32 = vmax.f32 %v1072_v24, %v1073_v27  ;;  %v1080_v33 = vrot.slane %v1079_v28, 4 }
 0x372   : > { %v1062_v34 = vmax.f32 %v1060_v25, %v1061_v30  ;;  %v1068_v61 = vrot.slane %v1067_v31, 2  ;;  %v1075_v35 = vrot.slane %v1074_v32, 2  ;;  %v1081_v36 = vmax.f32 %v1079_v28, %v1080_v33 }
 0x374   : > { %v1063_v37 = vrot.slane %v1062_v34, 1  ;;  %v1069_v38 = vmax.f32 %v1067_v31, %v1068_v61  ;;  %v1076_v39 = vmax.f32 %v1074_v32, %v1075_v35  ;;  %v1082_v40 = vrot.slane %v1081_v36, 2 }
 0x376   : > { %v1064_v41 = vmax.f32 %v1062_v34, %v1063_v37  ;;  %v1077_v42 = vrot.slane %v1076_v39, 1  ;;  %v1070_v43 = vrot.slane %v1069_v38, 1  ;;  %v1083_v44 = vmax.f32 %v1081_v36, %v1082_v40 }
 0x378   : > { %v1078_v46 = vmax.f32 %v1076_v39, %v1077_v42  ;;  %v1071_v47 = vmax.f32 %v1069_v38, %v1070_v43  ;;  %v1084_v48 = vrot.slane %v1083_v44, 1  ;;  %v1093_v50 = vadd.f32 %v1203_v45, %v1064_v41 }
 0x37a   : > { %v1085_v49 = vmax.f32 %v1083_v44, %v1084_v48  ;;  %v1095_v51 = vadd.f32 %v1203_v45, %v1078_v46  ;;  %v1094_v52 = vadd.f32 %v1203_v45, %v1071_v47  ;;  %v1097_v56 = vmax.f32 %v1093_v50, 0.0 }
 0x37c   : > { %v1096_v53 = vadd.f32 %v1203_v45, %v1085_v49  ;;  %v1099_v54 = vmax.f32 %v1095_v51, 0.0  ;;  %v1098_v14 = vmax.f32 %v1094_v52, 0.0 }
 0x37e   : > { %v1100_v57 = vmax.f32 %v1096_v53, 0.0  ;;  %v1103_v58 = vrot.slane %v1099_v54, 7 }
 0x380   : > { %v1109_v59 = vrot.slane %v1100_v57, 7  ;;  %v1104_v60 = vsel %vm713_vm1, %v1103_v58, %v1097_v56 }
 0x381   : > { %1106 = vst.msk [vmem:[%s252_s12] sm:$0x3] %vm622_vm0, %v1104_v60 }
 0x382   : > { %v1110_v62 = vsel %vm713_vm1, %v1109_v59, %v1098_v14 }
 0x383   : > { %1111 = vrot.lane.b32.xlu1 %v1110_v62, %s1754_s29 }
 0x3f5   : > { %v1112_v63 = vpop.permute.xlu1 %1111 }
 0x3f6   : > { %1115 = vst.msk [vmem:[%s252_s12] sm:$0x3] %vm1114_vm10, %v1112_v63 }
 0x3f7 PF: > { %s17_s18 = sadd.s32 1, %s1748_s18  }
 0x3f8   : > { %p14_p9 = scmp.ge.s32.totalorder %s17_s18, 4  }
 0x3fa   :  { %16 = sbr.rel (!%p14_p9) target bundleno = 2 (0x2), region = 79 }
 0x401   :  { %1135 = vsyncpa [#allocation4], 1 }
 0x402   :  { %1137 = vsyncpa [#allocation4 + $0x1], 1 }
 0x403   :  { %1138 = vsyncpa [#allocation6], 1 }

</bundles_post_ra>
